<compile_context>
chip_gen: v5e
topology: v5e:2x2
jax: 0.10.0
libtpu: 0.0.40
codegen_flags: <defaults>
</compile_context>

<pallas_src>
import jax
import jax.numpy as jnp
from jax.experimental import pallas as pl
from jax.experimental.pallas import tpu as pltpu

LN_EPS = 1e-5


def _round_up(n, m):
    return ((n + m - 1) // m) * m


def semantic_proj_kernel(x_ref, wp_ref, wc_ref, bc2_ref, g_ref, bt_ref, o_ref, h_ref):
    Bt, Tp, P = o_ref.shape
    Cp = wc_ref.shape[1]

    # Linear(E -> P): one big (Bt*Cp, E) @ (E, P) bf16 matmul, f32 accumulation.
    h = jnp.dot(x_ref[...], wp_ref[...], preferred_element_type=jnp.float32)
    # Stash in a bf16 VMEM scratch: bounds live ranges across the per-batch
    # loop below and directly feeds the bf16 conv matmul.
    h_ref[...] = h.astype(jnp.bfloat16)

    wc = wc_ref[...]            # (Tp, Cp)  bf16
    bc2 = bc2_ref[...]          # (Tp, P)   f32  (b_conv with b_proj folded in)
    g = g_ref[...]              # (1, P)    f32
    bt = bt_ref[...]            # (1, P)    f32
    inv_p = 1.0 / P

    def body(b, carry):
        start = pl.multiple_of(b * Cp, Cp)
        hb = h_ref[pl.ds(start, Cp), :]                            # (Cp, P) bf16
        # Conv1d(C -> T, kernel_size=1)  ==  (Tp, Cp) @ (Cp, P), bf16 on MXU.
        y = jnp.dot(wc, hb, preferred_element_type=jnp.float32) + bc2
        # LayerNorm over last dim P: one-pass sum / sum-of-squares.
        # NOTE: E[y^2]-mean^2 in f32, clamped >= 0; fine here since |mean| is
        # O(std).  Revert to two-pass if LN precision matters downstream.
        s = jnp.sum(y, axis=-1, keepdims=True)
        s2 = jnp.sum(y * y, axis=-1, keepdims=True)
        mean = s * inv_p
        var = jnp.maximum(s2 * inv_p - mean * mean, 0.0)
        y_n = (y - mean) * jax.lax.rsqrt(var + LN_EPS)
        o_ref[b] = (y_n * g + bt).astype(o_ref.dtype)
        return carry

    jax.lax.fori_loop(0, Bt, body, 0, unroll=True)


def semantic_proj(x, w_proj, b_proj, w_conv, b_conv, gamma, beta, *,
                  bt_max=16, out_dtype=jnp.bfloat16):
    """x:(B,C,E), w_proj:(E,P), b_proj:(1,P), w_conv:(T,C), b_conv:(T,1),
    gamma/beta:(1,P) -> (B,T,P) in `out_dtype`."""
    B, C, E = x.shape
    P = w_proj.shape[1]
    T = w_conv.shape[0]

    # Pad sublane dims so tiles are (8/16,128)-friendly; the (B,C)->(B*C)
    # collapse is then layout-preserving.
    Cp = _round_up(C, 16)     # bf16 sublane packing
    Tp = _round_up(T, 8)

    # Batch tile.  Guarantee >= 2 grid steps when B > 1 so v7x's two
    # TensorCores both get work under dimension_semantics=("parallel",).
    Bt = max(1, min(bt_max, B))
    if B > 1 and pl.cdiv(B, Bt) < 2:
        Bt = pl.cdiv(B, 2)
    Bp = _round_up(B, Bt)
    n_steps = Bp // Bt

    # TODO(synk): ideally the upstream producer emits x already in bf16 with
    # the (C -> Cp) padding so this pad/cast pre-pass (an extra HBM round trip
    # of x) disappears; kept here so the script is self-contained.
    x_p = jnp.pad(x.astype(jnp.bfloat16), ((0, Bp - B), (0, Cp - C), (0, 0)))
    x_p = x_p.reshape(Bp * Cp, E)                                   # collapse in XLA

    wp = w_proj.astype(jnp.bfloat16)                                # (E, P)
    wc = jnp.pad(w_conv, ((0, Tp - T), (0, Cp - C))).astype(jnp.bfloat16)  # (Tp, Cp)
    # Fold b_proj through the conv:  y = wc @ (x @ wp) + bc2,
    #   bc2[t, p] = b_conv[t, 0] + (sum_c w_conv[t, c]) * b_proj[0, p]
    bc2 = (b_conv.astype(jnp.float32)
           + jnp.sum(w_conv, axis=1, keepdims=True).astype(jnp.float32)
           * b_proj.astype(jnp.float32))                            # (T, P)
    bc2 = jnp.pad(bc2, ((0, Tp - T), (0, 0)))                       # (Tp, P)
    g = gamma.astype(jnp.float32)                                   # (1, P)
    bt = beta.astype(jnp.float32)                                   # (1, P)

    # Grid-invariant operands: whole array resident in VMEM (single buffer).
    vmem_full = pl.BlockSpec(memory_space=pltpu.MemorySpace.VMEM)

    itemsize_out = jnp.dtype(out_dtype).itemsize
    x_tile_bytes = Bt * Cp * E * 2
    out_tile_bytes = Bt * Tp * P * itemsize_out
    const_bytes = (wp.size + wc.size) * 2 + (bc2.size + g.size + bt.size) * 4
    scratch_bytes = Bt * Cp * P * 2
    vmem_needed = 2 * x_tile_bytes + 2 * out_tile_bytes + const_bytes + scratch_bytes
    # Explicit limit with headroom, capped for v7x's 64 MiB physical VMEM.
    vmem_limit = int(min(64 * 1024 * 1024,
                         max(32 * 1024 * 1024, int(vmem_needed * 1.25))))

    flops = 2 * Bp * Cp * E * P + 2 * Bp * Tp * Cp * P
    bytes_accessed = x_p.size * 2 + const_bytes + Bp * Tp * P * itemsize_out

    out = pl.pallas_call(
        semantic_proj_kernel,
        out_shape=jax.ShapeDtypeStruct((Bp, Tp, P), out_dtype),
        grid_spec=pltpu.PrefetchScalarGridSpec(
            num_scalar_prefetch=0,
            grid=(n_steps,),
            in_specs=[
                pl.BlockSpec((Bt * Cp, E), lambda b: (b, 0)),  # collapsed x tile
                vmem_full,   # w_proj  (bf16)
                vmem_full,   # w_conv  (bf16, padded)
                vmem_full,   # folded conv+proj bias (f32)
                vmem_full,   # gamma
                vmem_full,   # beta
            ],
            out_specs=pl.BlockSpec((Bt, Tp, P), lambda b: (b, 0, 0)),
            scratch_shapes=[pltpu.VMEM((Bt * Cp, P), jnp.bfloat16)],
        ),
        compiler_params=pltpu.CompilerParams(
            dimension_semantics=("parallel",),
            vmem_limit_bytes=vmem_limit,
        ),
        cost_estimate=pl.CostEstimate(
            flops=int(flops), transcendentals=int(Bp * Tp),
            bytes_accessed=int(bytes_accessed)),
    )(x_p, wp, wc, bc2, g, bt)

    return out[:B, :T, :]


def reference_f32(x, w_proj, b_proj, w_conv, b_conv, gamma, beta):
    """Pure-f32 reference matching the PyTorch module."""
    h = jnp.einsum("bce,ep->bcp", x, w_proj) + b_proj
    y = jnp.einsum("tc,bcp->btp", w_conv, h) + b_conv[:, 0][None, :, None]
    mean = jnp.mean(y, axis=-1, keepdims=True)
    var = jnp.mean(jnp.square(y - mean), axis=-1, keepdims=True)
    return (y - mean) * jax.lax.rsqrt(var + LN_EPS) * gamma[0] + beta[0]


def reference_mixed(x, w_proj, b_proj, w_conv, b_conv, gamma, beta):
    """Mirrors the kernel's precision: bf16 matmuls with f32 accumulation,
    bf16 h intermediate, f32 folded bias and LayerNorm."""
    h = jnp.einsum("bce,ep->bcp",
                   x.astype(jnp.bfloat16), w_proj.astype(jnp.bfloat16),
                   preferred_element_type=jnp.float32).astype(jnp.bfloat16)
    y = jnp.einsum("tc,bcp->btp", w_conv.astype(jnp.bfloat16), h,
                   preferred_element_type=jnp.float32)
    bc2 = b_conv + jnp.sum(w_conv, axis=1, keepdims=True) * b_proj   # (T, P)
    y = y + bc2[None]
    mean = jnp.mean(y, axis=-1, keepdims=True)
    var = jnp.mean(jnp.square(y - mean), axis=-1, keepdims=True)
    return (y - mean) * jax.lax.rsqrt(var + LN_EPS) * gamma[0] + beta[0]


if __name__ == "__main__":
    # Small shapes consistent with the module's forward:
    #   C "channels" stands in for 63, T clip_text_dim for 77,
    #   E embedding_dim for 1024, P proj_clip_dim for 1024.
    def run_case(B, C, T, E, P, seed):
        key = jax.random.PRNGKey(seed)
        kx, kwp, kbp, kwc, kbc = jax.random.split(key, 5)

        x = jax.random.normal(kx, (B, C, E), dtype=jnp.float32)
        w_proj = jax.random.uniform(kwp, (E, P), jnp.float32, -1.0, 1.0) / jnp.sqrt(E)
        b_proj = jax.random.uniform(kbp, (1, P), jnp.float32, -1.0, 1.0) / jnp.sqrt(E)
        w_conv = jax.random.uniform(kwc, (T, C), jnp.float32, -1.0, 1.0) / jnp.sqrt(C)
        b_conv = jax.random.uniform(kbc, (T, 1), jnp.float32, -1.0, 1.0) / jnp.sqrt(C)
        gamma = jnp.ones((1, P), jnp.float32)   # LayerNorm weight init = 1
        beta = jnp.zeros((1, P), jnp.float32)   # LayerNorm bias init = 0

        # f32 output for tight numerical checks.
        out = semantic_proj(x, w_proj, b_proj, w_conv, b_conv, gamma, beta,
                            out_dtype=jnp.float32)
        out = jax.block_until_ready(out)
        assert out.shape == (B, T, P)

        # Tight check vs a reference with the kernel's mixed precision.
        ref_mp = reference_mixed(x, w_proj, b_proj, w_conv, b_conv, gamma, beta)
        assert jnp.allclose(out, ref_mp, atol=1e-2, rtol=1e-2), float(
            jnp.max(jnp.abs(out - ref_mp)))

        # Looser sanity check vs the full-f32 PyTorch-equivalent reference.
        ref_fp = reference_f32(x, w_proj, b_proj, w_conv, b_conv, gamma, beta)
        assert jnp.allclose(out, ref_fp, atol=1e-1, rtol=1e-1), float(
            jnp.max(jnp.abs(out - ref_fp)))

        # bf16 output path (perf default).
        out_bf = semantic_proj(x, w_proj, b_proj, w_conv, b_conv, gamma, beta)
        out_bf = jax.block_until_ready(out_bf)
        assert out_bf.dtype == jnp.bfloat16 and out_bf.shape == (B, T, P)
        assert jnp.allclose(out_bf.astype(jnp.float32), ref_mp,
                            atol=5e-2, rtol=5e-2), float(
            jnp.max(jnp.abs(out_bf.astype(jnp.float32) - ref_mp)))

    # B=2: C padded 8->16; grid forced to 2 steps (v7x two-TC rule).
    run_case(B=2, C=8, T=16, E=32, P=32, seed=0)
    # B=5: exercises batch padding (Bt=3, Bp=6, padded batch rows discarded).
    run_case(B=5, C=8, T=16, E=32, P=32, seed=1)

    print("KERNEL_OK")
</pallas_src>

<mosaic_0001>
module attributes {stable_mosaic.version = 11 : i64} {
  func.func @semantic_proj_kernel(%arg0: i32, %arg1: memref<16x32xbf16, #tpu.memory_space<vmem>>, %arg2: memref<32x32xbf16, #tpu.memory_space<vmem>>, %arg3: memref<16x16xbf16, #tpu.memory_space<vmem>>, %arg4: memref<16x32xf32, #tpu.memory_space<vmem>>, %arg5: memref<1x32xf32, #tpu.memory_space<vmem>>, %arg6: memref<1x32xf32, #tpu.memory_space<vmem>>, %arg7: memref<1x16x32xf32, #tpu.memory_space<vmem>>, %arg8: memref<16x32xbf16, #tpu.memory_space<vmem>>) attributes {dimension_semantics = [#tpu.dimension_semantics<parallel>], iteration_bounds = array<i64: 2>, scalar_prefetch = 0 : i64, scratch_operands = 1 : i64, tpu.core_type = #tpu.core_type<tc>, window_params = [{transform_indices = @transform_0, window_bounds = array<i64: 16, 32>}, {pipeline_mode = #tpu.pipeline_mode<synchronous>, transform_indices = @transform_1, window_bounds = array<i64: 32, 32>}, {pipeline_mode = #tpu.pipeline_mode<synchronous>, transform_indices = @transform_2, window_bounds = array<i64: 16, 16>}, {pipeline_mode = #tpu.pipeline_mode<synchronous>, transform_indices = @transform_3, window_bounds = array<i64: 16, 32>}, {pipeline_mode = #tpu.pipeline_mode<synchronous>, transform_indices = @transform_4, window_bounds = array<i64: 1, 32>}, {pipeline_mode = #tpu.pipeline_mode<synchronous>, transform_indices = @transform_5, window_bounds = array<i64: 1, 32>}, {transform_indices = @transform_6, window_bounds = array<i64: 1, 16, 32>}]} {
    %c0 = arith.constant 0 : index
    %c0_0 = arith.constant 0 : index
    %0 = vector.load %arg1[%c0, %c0_0] : memref<16x32xbf16, #tpu.memory_space<vmem>>, vector<16x32xbf16>
    %c0_1 = arith.constant 0 : index
    %c0_2 = arith.constant 0 : index
    %1 = vector.load %arg2[%c0_1, %c0_2] : memref<32x32xbf16, #tpu.memory_space<vmem>>, vector<32x32xbf16>
    %cst = arith.constant dense<0.000000e+00> : vector<16x32xf32>
    %2 = tpu.matmul %0, %1, %cst {dimension_numbers = #tpu.dot_dimension_numbers<[1], [0], [0], [1], [0, 0, 1, 1], [], []>} : vector<16x32xbf16>, vector<32x32xbf16>, vector<16x32xf32> -> vector<16x32xf32>
    %3 = arith.truncf %2 : vector<16x32xf32> to vector<16x32xbf16>
    %c0_3 = arith.constant 0 : index
    %c0_4 = arith.constant 0 : index
    %4 = vector.load %arg8[%c0_3, %c0_4] : memref<16x32xbf16, #tpu.memory_space<vmem>>, vector<16x32xbf16>
    tpu.vector_store %arg8[%c0_3, %c0_4], %3 {strides = array<i32>} : memref<16x32xbf16, #tpu.memory_space<vmem>>, vector<16x32xbf16>,
    %c0_5 = arith.constant 0 : index
    %c0_6 = arith.constant 0 : index
    %5 = vector.load %arg3[%c0_5, %c0_6] : memref<16x16xbf16, #tpu.memory_space<vmem>>, vector<16x16xbf16>
    %c0_7 = arith.constant 0 : index
    %c0_8 = arith.constant 0 : index
    %6 = vector.load %arg4[%c0_7, %c0_8] : memref<16x32xf32, #tpu.memory_space<vmem>>, vector<16x32xf32>
    %c0_9 = arith.constant 0 : index
    %c0_10 = arith.constant 0 : index
    %7 = vector.load %arg5[%c0_9, %c0_10] : memref<1x32xf32, #tpu.memory_space<vmem>>, vector<1x32xf32>
    %c0_11 = arith.constant 0 : index
    %c0_12 = arith.constant 0 : index
    %8 = vector.load %arg6[%c0_11, %c0_12] : memref<1x32xf32, #tpu.memory_space<vmem>>, vector<1x32xf32>
    %c0_i32 = arith.constant 0 : i32
    %c16_i32 = arith.constant 16 : i32
    %9 = arith.muli %c0_i32, %c16_i32 : i32
    %10 = tpu.assume_multiple %9, 16 : i32
    %11 = arith.index_cast %10 : i32 to index
    %c0_13 = arith.constant 0 : index
    %12 = vector.load %arg8[%11, %c0_13] : memref<16x32xbf16, #tpu.memory_space<vmem>>, vector<16x32xbf16>
    %cst_14 = arith.constant dense<0.000000e+00> : vector<16x32xf32>
    %13 = tpu.matmul %5, %12, %cst_14 {dimension_numbers = #tpu.dot_dimension_numbers<[1], [0], [0], [1], [0, 0, 1, 1], [], []>} : vector<16x16xbf16>, vector<16x32xbf16>, vector<16x32xf32> -> vector<16x32xf32>
    %14 = arith.addf %13, %6 : vector<16x32xf32>
    %cst_15 = arith.constant dense<0.000000e+00> : vector<16xf32>
    %15 = vector.multi_reduction <add>, %14, %cst_15 [1] : vector<16x32xf32> to vector<16xf32>
    %16 = vector.shape_cast %15 : vector<16xf32> to vector<16x1xf32>
    %17 = arith.mulf %14, %14 : vector<16x32xf32>
    %cst_16 = arith.constant dense<0.000000e+00> : vector<16xf32>
    %18 = vector.multi_reduction <add>, %17, %cst_16 [1] : vector<16x32xf32> to vector<16xf32>
    %19 = vector.shape_cast %18 : vector<16xf32> to vector<16x1xf32>
    %cst_17 = arith.constant 3.125000e-02 : f32
    %20 = vector.broadcast %cst_17 : f32 to vector<16x1xf32>
    %21 = arith.mulf %16, %20 : vector<16x1xf32>
    %cst_18 = arith.constant 3.125000e-02 : f32
    %22 = vector.broadcast %cst_18 : f32 to vector<16x1xf32>
    %23 = arith.mulf %19, %22 : vector<16x1xf32>
    %24 = arith.mulf %21, %21 : vector<16x1xf32>
    %25 = arith.subf %23, %24 : vector<16x1xf32>
    %cst_19 = arith.constant 0.000000e+00 : f32
    %26 = vector.broadcast %cst_19 : f32 to vector<16x1xf32>
    %27 = arith.maximumf %25, %26 : vector<16x1xf32>
    %28 = vector.broadcast %21 : vector<16x1xf32> to vector<16x32xf32>
    %29 = arith.subf %14, %28 : vector<16x32xf32>
    %cst_20 = arith.constant 9.99999974E-6 : f32
    %30 = vector.broadcast %cst_20 : f32 to vector<16x1xf32>
    %31 = arith.addf %27, %30 : vector<16x1xf32>
    %32 = math.rsqrt %31 : vector<16x1xf32>
    %33 = vector.broadcast %32 : vector<16x1xf32> to vector<16x32xf32>
    %34 = arith.mulf %29, %33 : vector<16x32xf32>
    %35 = vector.broadcast %7 : vector<1x32xf32> to vector<16x32xf32>
    %36 = arith.mulf %34, %35 : vector<16x32xf32>
    %37 = vector.broadcast %8 : vector<1x32xf32> to vector<16x32xf32>
    %38 = arith.addf %36, %37 : vector<16x32xf32>
    %39 = arith.index_cast %c0_i32 : i32 to index
    %c0_21 = arith.constant 0 : index
    %c0_22 = arith.constant 0 : index
    %40 = vector.load %arg7[%39, %c0_21, %c0_22] : memref<1x16x32xf32, #tpu.memory_space<vmem>>, vector<1x16x32xf32>
    %41 = vector.shape_cast %40 : vector<1x16x32xf32> to vector<16x32xf32>
    %42 = vector.shape_cast %38 : vector<16x32xf32> to vector<1x16x32xf32>
    tpu.vector_store %arg7[%39, %c0_21, %c0_22], %42 {strides = array<i32>} : memref<1x16x32xf32, #tpu.memory_space<vmem>>, vector<1x16x32xf32>,
    %c1_i32 = arith.constant 1 : i32
    return
  }
  func.func @transform_0(%arg0: i32) -> (i32, i32) {
    %c0_i32 = arith.constant 0 : i32
    %c0_i32_0 = arith.constant 0 : i32
    return %arg0, %c0_i32 : i32, i32
  }
  func.func @transform_1(%arg0: i32) -> (i32, i32) {
    %c0_i32 = arith.constant 0 : i32
    %c0_i32_0 = arith.constant 0 : i32
    %c0_i32_1 = arith.constant 0 : i32
    return %c0_i32, %c0_i32_0 : i32, i32
  }
  func.func @transform_2(%arg0: i32) -> (i32, i32) {
    %c0_i32 = arith.constant 0 : i32
    %c0_i32_0 = arith.constant 0 : i32
    %c0_i32_1 = arith.constant 0 : i32
    return %c0_i32, %c0_i32_0 : i32, i32
  }
  func.func @transform_3(%arg0: i32) -> (i32, i32) {
    %c0_i32 = arith.constant 0 : i32
    %c0_i32_0 = arith.constant 0 : i32
    %c0_i32_1 = arith.constant 0 : i32
    return %c0_i32, %c0_i32_0 : i32, i32
  }
  func.func @transform_4(%arg0: i32) -> (i32, i32) {
    %c0_i32 = arith.constant 0 : i32
    %c0_i32_0 = arith.constant 0 : i32
    %c0_i32_1 = arith.constant 0 : i32
    return %c0_i32, %c0_i32_0 : i32, i32
  }
  func.func @transform_5(%arg0: i32) -> (i32, i32) {
    %c0_i32 = arith.constant 0 : i32
    %c0_i32_0 = arith.constant 0 : i32
    %c0_i32_1 = arith.constant 0 : i32
    return %c0_i32, %c0_i32_0 : i32, i32
  }
  func.func @transform_6(%arg0: i32) -> (i32, i32, i32) {
    %c0_i32 = arith.constant 0 : i32
    %c0_i32_0 = arith.constant 0 : i32
    %c0_i32_1 = arith.constant 0 : i32
    return %arg0, %c0_i32, %c0_i32_0 : i32, i32, i32
  }
}

</mosaic_0001>

<bundles_post_ra>
// kernel: tpu_custom_call.1
= control target key start
LH: loop header
LB: loop body
LE: loop exit
PB: predicated region body
PF: predicated region fallthrough
CT: control target
= control target key end

     0   :  { %11 = vsyncpa [#allocation4], 0  ;;  %s1146_s0 = inlined_call_operand.hbm [shape: bf16[32,32], index: 0, kind: input, shape index: {}]   ;;  %s1147_s1 = inlined_call_operand.hbm [shape: bf16[32,32], index: 1, kind: input, shape index: {}]   ;;  %s1148_s2 = inlined_call_operand.hbm [shape: bf16[16,16], index: 2, kind: input, shape index: {}]   ;;  %s1149_s3 = inlined_call_operand.hbm [shape: f32[16,32], index: 3, kind: input, shape index: {}]   ;;  %s1150_s4 = inlined_call_operand.vmem [shape: f32[1,32], index: 4, kind: input, shape index: {}]   ;;  %s1151_s5 = inlined_call_operand.vmem [shape: f32[1,32], index: 5, kind: input, shape index: {}]   ;;  %s1152_s6 = inlined_call_operand.hbm [shape: f32[2,16,32], index: 6, kind: output, shape index: {}]  }
   0x1   :  { %13 = vsyncpa [#allocation4 + $0x1], 0 }
   0x2   :  { %14 = vsyncpa [#allocation7], 0 }
   0x3   :  { %15 = vsyncpa [#allocation10], 0 }
   0x4   :  { %16 = vsyncpa [#allocation5], 0 }
   0x5   :  { %18 = vsyncpa [#allocation5 + $0x1], 0  ;;  %s965_s21 = smov 0   ;;  %s967_s22 = smov 0  }
   0x6   :  { %s969_s23 = smov 0   ;;  %s971_s24 = smov 0  }
   0x7 LB: > { %s986_s25 = sadd.s32 4294967295, %s919_s24   ;;  %s587_s26 = sadd.s32 4294967294, %s919_s24   ;;  %s919_s24 = sphi %s971_s24, %s1167_s24   ;;  %s915_s23 = sphi %s969_s23, %s1166_s23   ;;  %s911_s22 = sphi %s967_s22, %s1165_s22   ;;  %s907_s21 = sphi %s965_s21, %s1164_s21  }
   0x8   : > { %p44_p0 = scmp.ne.s32.totalorder %s911_s22, %s907_s21  ;;  %p45_p1 = scmp.eq.s32.totalorder %s986_s25, 0 }
   0x9   : > { %p173_p2 = scmp.eq.s32.totalorder %s986_s25, 1  ;;  %p179_p3 = scmp.eq.s32.totalorder %s587_s26, 1 }
   0xa   : > { %p995_p4 = por %p45_p1, %p44_p0  ;;  %p588_p5 = scmp.ge.s32.totalorder %s919_s24, 1 }
   0xb   : > { %p1000_p6 = por %p179_p3, %p44_p0  ;;  %p186_p7 = scmp.lt.s32.totalorder %s919_s24, 3 }
   0xc   : > { %s197_s7 = sshll.u32 %s1147_s1, 4  ;;  %s921_s9 = smov [#allocation6]   ;;  %s198_s7 = int_to_ptr.hbm [resolvable:$true] %s197_s7 }
   0xd   : > { %p1008_p8 = pnand %p588_p5, %p186_p7  ;;  %s199_s10 = sshll.u32 %s921_s9, 4  ;;  %s200_s10 = int_to_ptr.vmem [resolvable:$true] %s199_s10 }
   0xe   : > { %s211_s14 = sshll.u32 %s1148_s2, 4  ;;  %s1153_s15 = smov 64   ;;  %s212_s14 = int_to_ptr.hbm [resolvable:$true] %s211_s14 }
   0xf   : > { %p652_p9 = pneg %p1008_p8  ;;  %s1154_s16 = smov 4  }
  0x10   : > { %s924_s17 = smov [#allocation8]   ;;  %s225_s26 = sshll.u32 %s1149_s3, 4  ;;  %s226_s26 = int_to_ptr.hbm [resolvable:$true] %s225_s26 }
  0x11   : > { %p1016_p10 = pnand %p652_p9, %p45_p1  ;;  %s213_s18 = sshll.u32 %s924_s17, 4  ;;  %s214_s18 = int_to_ptr.vmem [resolvable:$true] %s213_s18 }
  0x12   : > { %s925_s29 = smov [#allocation9]   ;;  %s927_s9 = smov 8  }
  0x13   : > { %655 = dma.hbm_to_vmem [thread:$0]  (!%p1016_p10), %s198_s7, 256, %s200_s10, [#allocation7], %s1153_s15, %s1153_s15, %s1154_s16  }
  0x14   : > { %658 = dma.hbm_to_vmem [thread:$0]  (!%p1016_p10), %s212_s14, 128, %s214_s18, [#allocation7], %s1153_s15, %s1153_s15, %s1154_s16  }
  0x15   : > { %s227_s30 = sshll.u32 %s925_s29, 4  ;;  %s926_s7 = smov 128   ;;  %s228_s30 = int_to_ptr.vmem [resolvable:$true] %s227_s30 }
  0x16   : > { %661 = dma.hbm_to_vmem [thread:$0]  (!%p1016_p10), %s226_s26, 256, %s228_s30, [#allocation10], %s926_s7, %s926_s7, %s927_s9  }
  0x17   : > { %s1040_s10 = sadd.s32 1, %s919_s24   ;;  %s31_s13 = sadd.s32 1, %s915_s23 }
  0x18   : > { %s28_s12 = ssub.s32 %s919_s24, %s1040_s10  ;;  %p38_p13 = scmp.ne.s32.totalorder %s915_s23, %s911_s22 }
  0x19   : > { %p29_p12 = scmp.eq.s32.totalorder %s28_s12, 0  ;;  %p39_p0 = scmp.eq.s32.totalorder %s919_s24, 0 }
  0x1a   : > { %p1053_p3 = por %p173_p2, %p38_p13  ;;  %p673_p5 = scmp.lt.s32.totalorder %s919_s24, 2 }
  0x1b   : > { %s1049_s17 = scalar_select %p29_p12, %s915_s23, %s31_s13  }
  0x1c   : > { %s247_s18 = sand.u32 1, %s915_s23   ;;  %s629_s19 = sshll.u32 %s919_s24, 3 }
  0x1d   : > { %p40_p7 = por %p39_p0, %p38_p13  ;;  %s593_s11 = sshll.u32 %s247_s18, 3 }
  0x1e   : > { %s256_s29 = scalar_lea.hbm %s1146_s0, %s629_s19  ;;  %s251_s7 = scalar_lea.vmem [#allocation3], %s593_s11 }
  0x1f   : > { %s257_s30 = sshll.u32 %s256_s29, 4  ;;  %s259_s9 = sshll.u32 %s251_s7, 4  ;;  %s258_s30 = int_to_ptr.hbm [resolvable:$true] %s257_s30  ;;  %s260_s9 = int_to_ptr.vmem [resolvable:$true] %s259_s9 }
  0x20   : > { %p1063_p9 = pnand %p673_p5, %p40_p7  ;;  %s248_s13 = scalar_lea.sflag [#allocation4], %s247_s18 }
  0x21   : > { %s815_s15 = sshra.s32 %s258_s30, 4  ;;  %s822_s11 = scalar_lea.hbm %s1146_s0, 16  ;;  %s816_s15 = int_to_ptr.hbm [resolvable:$true] %s815_s15 }
  0x22   : > { %s817_s16 = scalar_lea.hbm %s816_s15, 8  ;;  %p819_p10 = pneg %p1063_p9 }
  0x23   : > { %p818_p2 = scmp.ne.s32.totalorder %s816_s15, %s817_s16  ;;  %p823_p0 = scmp.lt.s32.totalorder %s816_s15, %s1146_s0 }
  0x24   : > { %p824_p5 = scmp.lt.s32.totalorder %s822_s11, %s817_s16 }
  0x25   : > { %p820_p12 = pnand %p819_p10, %p818_p2 }
  0x26   : > { %p825_p7 = por %p824_p5, %p823_p0 }
  0x27   : > { %p821_p13 = pneg %p820_p12 }
  0x29   : > { %p826_p11 = pnand %p825_p7, %p821_p13 }
  0x2b   : > { %829 = shalt.err (!%p826_p11)
}
  0x2c   : > { %s1161_s18 = smov 4   ;;  %s1162_s7 = smov 64  }
  0x2d   : > { %665 = dma.hbm_to_vmem [thread:$0]  (!%p1063_p9), %s258_s30, 128, %s260_s9, %s248_s13, %s1162_s7, %s1162_s7, %s1161_s18  }
  0x2e   : > { %271 = sbr.rel (%p1008_p8) target bundleno = 502 (0x1f6), region = 44  ;;  %s1083_s19 = sand.u32 (!%p1008_p8), 1, %s911_s22  }
  0x2f   : > { %s597_s15 = sshll.u32 (!%p1008_p8), %s1083_s19, 3  ;;  %s274_s16 = scalar_lea.sflag (!%p1008_p8), [#allocation4], %s1083_s19 }
  0x30   : > { %s277_s20 = scalar_lea.vmem (!%p1008_p8), [#allocation3], %s597_s15 }
  0x33   : > { %890 = dma.done.wait (%p995_p4), %s274_s16, 128  }
  0x34   : > { %892 = vsyncadd (%p995_p4), %s274_s16, 4294967168 }
  0x35   : > { %894 = dma.done.wait (%p45_p1), [#allocation7], 384  }
  0x36   : > { %896 = vsyncadd (%p45_p1), [#allocation7], 4294966912 }
  0x37   : > { %898 = dma.done.wait (%p45_p1), [#allocation10], 256  }
  0x38   : > { %900 = vsyncadd (%p45_p1), [#allocation10], 4294967040  ;;  %v632_v0 = vld [vmem:[#allocation6 + $0x8] sm:$0xff]  ;;  %v631_v1 = vld [vmem:[#allocation6] sm:$0xff]  ;;  %vm347_vm0 = vcmask 261120   ;;  %vm367_vm1 = vcmask 257024  }
  0x39   : > { %357 = vmatpush.bf16.msra.mxu0 %v632_v0  ;;  %v630_v2 = vld [vmem:[%s277_s20] sm:$0xff]  ;;  %vm389_vm2 = vcmask 130048   ;;  %v373_v15 = vld [vmem:[#allocation9 + $0x8] sm:$0xff]  ;;  %v719_v45 = vld [vmem:[%s1150_s4] ss:$0 sm:$0xff]  ;;  %s601_s12 = sshll.u32 %s1083_s19, 4 }
  0x3a   : > { %v633_v8 = vld [vmem:[#allocation8] sm:$0xff]  ;;  %v372_v9 = vld [vmem:[#allocation9] sm:$0xff]  ;;  %v720_v48 = vld [vmem:[%s1151_s5] ss:$0 sm:$0xff]  ;;  %s635_s13 = sshll.u32 %s986_s25, 4  ;;  %s321_s11 = scalar_lea.vmem [#allocation11], %s601_s12 }
  0x3b   : > { %s481_s18 = scalar_lea.hbm %s1152_s6, %s635_s13  ;;  %s482_s7 = sshll.u32 %s321_s11, 4  ;;  %s483_s7 = int_to_ptr.vmem [resolvable:$true] %s482_s7 }
  0x3c   : > { %s484_s25 = sshll.u32 %s481_s18, 4  ;;  %s470_s15 = scalar_lea.sflag [#allocation5], %s1083_s19  ;;  %s485_s25 = int_to_ptr.hbm [resolvable:$true] %s484_s25 }
  0x3d   : > { %358 = vmatpush.bf16.msra.mxu0 %v631_v1  ;;  %s859_s16 = sshra.s32 %s485_s25, 4  ;;  %s865_s30 = scalar_lea.hbm %s1152_s6, 32  ;;  %s860_s16 = int_to_ptr.hbm [resolvable:$true] %s859_s16 }
  0x3e   : > { %s861_s20 = scalar_lea.hbm %s860_s16, 16  ;;  %p866_p11 = scmp.lt.s32.totalorder %s860_s16, %s1152_s6 }
  0x3f   : > { %p862_p1 = scmp.ne.s32.totalorder %s860_s16, %s861_s20  ;;  %p867_p9 = scmp.lt.s32.totalorder %s865_s30, %s861_s20 }
  0x40   : > { %614 = vmatmul.msk.bf16.vlgmr.msra.gmra.mxu0 %vm347_vm0, %v630_v2 }
  0x41   : > { %p863_p4 = pnand %p862_p1, %p1053_p3  ;;  %p868_p2 = por %p867_p9, %p866_p11 }
  0x43   : > { %p864_p8 = pneg %p863_p4 }
  0x45   : > { %p869_p10 = pnand %p868_p2, %p864_p8 }
  0xbd   : > { %v360_v3 = vpop.f32.mrf.mxu0 }
  0xbe   : > { %v365_v4 = vpack.c.bf16 %v360_v3, %v360_v3 }
  0xc0   : > { %368 = vst.msk [vmem:[#allocation2] sm:$0xf] %vm367_vm1, %v365_v4 }
  0xc5   : > { %v362_v5 = vpop.f32.mrf.mxu0 }
  0xc6   : > { %v366_v6 = vpack.c.bf16 %v362_v5, %v362_v5 }
  0xc8   : > { %369 = vst.msk [vmem:[#allocation2 + $0x4] sm:$0xf] %vm367_vm1, %v366_v6 }
  0xcf   : > { %v634_v7 = vld [vmem:[#allocation2] sm:$0xff] }
  0xd0   : > { %400 = vmatpush.bf16.msra.mxu1 %v634_v7 }
  0xd3   : > { %623 = vmatmul.msk.bf16.vlgmr.msra.gmra.mxu1 %vm389_vm2, %v633_v8 }
 0x150   : > { %v402_v10 = vpop.f32.mrf.mxu1 }
 0x151   : > { %v403_v11 = vadd.f32 %v402_v10, %v372_v9 }
 0x153   : > { %v407_v12 = vsel %vm347_vm0, %v403_v11, 0.0  ;;  %v413_v13 = vmul.f32 %v403_v11, %v403_v11 }
 0x154   : > { %408 = vadd.xlane.f32.xlu0 %v407_v12 }
 0x155   : > { %v415_v14 = vsel %vm347_vm0, %v413_v13, 0.0 }
 0x156   : > { %416 = vadd.xlane.f32.xlu1 %v415_v14 }
 0x158   : > { %v404_v16 = vpop.f32.mrf.mxu1 }
 0x159   : > { %v405_v17 = vadd.f32 %v404_v16, %v373_v15 }
 0x15b   : > { %v410_v18 = vsel %vm347_vm0, %v405_v17, 0.0  ;;  %v414_v19 = vmul.f32 %v405_v17, %v405_v17 }
 0x15c   : > { %411 = vadd.xlane.f32.xlu0 %v410_v18 }
 0x15d   : > { %v418_v20 = vsel %vm347_vm0, %v414_v19, 0.0 }
 0x15e   : > { %419 = vadd.xlane.f32.xlu1 %v418_v20 }
 0x1c7   : > { %v409_v21 = vpop.xlane.xlu0 %408 }
 0x1c8   : > { %v421_v22 = vmul.f32 0.03125, %v409_v21 }
 0x1c9   : > { %v417_v23 = vpop.xlane.xlu1 %416 }
 0x1ca   : > { %v425_v24 = vmul.f32 %v421_v22, %v421_v22  ;;  %v423_v25 = vmul.f32 0.03125, %v417_v23  ;;  %v431_v44 = vsub.f32 %v403_v11, %v421_v22 }
 0x1cc   : > { %v427_v26 = vsub.f32 %v423_v25, %v425_v24 }
 0x1ce   : > { %v429_v27 = vmax.f32 %v427_v26, 0.0 }
 0x1cf   : > { %v412_v28 = vpop.xlane.xlu0 %411 }
 0x1d0   : > { %v433_v29 = vadd.f32 1e-05, %v429_v27  ;;  %v422_v30 = vmul.f32 0.03125, %v412_v28 }
 0x1d1   : > { %v420_v31 = vpop.xlane.xlu1 %419 }
 0x1d2   : > { %721 = vrsqrt.f32 %v433_v29  ;;  %v426_v32 = vmul.f32 %v422_v30, %v422_v30  ;;  %v424_v33 = vmul.f32 0.03125, %v420_v31  ;;  %vm441_vm4 = vweird.f32 %v433_v29 }
 0x1d3   : > { %v432_v56 = vsub.f32 %v405_v17, %v422_v30 }
 0x1d4   : > { %v428_v34 = vsub.f32 %v424_v33, %v426_v32 }
 0x1d6   : > { %v430_v35 = vmax.f32 %v428_v34, 0.0 }
 0x1d8   : > { %v722_v36 = vpop.eup %721  ;;  %v434_v38 = vadd.f32 1e-05, %v430_v35 }
 0x1d9   : > { %v436_v37 = vmul.f32 %v722_v36, %v433_v29  ;;  %vm442_vm3 = vweird.f32 %v722_v36 }
 0x1da   : > { %723 = vrsqrt.f32 %v434_v38  ;;  %vm443_vm5 = vmor %vm441_vm4, %vm442_vm3  ;;  %vm451_vm7 = vweird.f32 %v434_v38 }
 0x1db   : > { %v437_v39 = vmul.f32 %v722_v36, %v436_v37 }
 0x1dd   : > { %v438_v40 = vmul.f32 0.5, %v437_v39 }
 0x1df   : > { %v439_v41 = vsub.f32 1.5, %v438_v40 }
 0x1e0   : > { %v724_v42 = vpop.eup %723 }
 0x1e1   : > { %v440_v43 = vmul.f32 %v722_v36, %v439_v41  ;;  %v446_v46 = vmul.f32 %v724_v42, %v434_v38  ;;  %vm452_vm6 = vweird.f32 %v724_v42 }
 0x1e2   : > { %vm453_vm8 = vmor %vm451_vm7, %vm452_vm6 }
 0x1e3   : > { %v444_v47 = vsel %vm443_vm5, %v722_v36, %v440_v43  ;;  %v447_v50 = vmul.f32 %v724_v42, %v446_v46 }
 0x1e4   : > { %v455_v49 = vmul.f32 %v444_v47, %v431_v44 }
 0x1e5   : > { %v448_v52 = vmul.f32 0.5, %v447_v50 }
 0x1e6   : > { %v460_v51 = vmul.f32 %v719_v45, %v455_v49 }
 0x1e7   : > { %v449_v54 = vsub.f32 1.5, %v448_v52 }
 0x1e8   : > { %v465_v53 = vadd.f32 %v720_v48, %v460_v51 }
 0x1e9   : > { %v450_v55 = vmul.f32 %v724_v42, %v449_v54 }
 0x1ea   : > { %467 = vst.msk [vmem:[%s321_s11] sm:$0xff] %vm347_vm0, %v465_v53 }
 0x1eb   : > { %v454_v57 = vsel %vm453_vm8, %v724_v42, %v450_v55 }
 0x1ec   : > { %v456_v58 = vmul.f32 %v454_v57, %v432_v56 }
 0x1ee   : > { %v461_v59 = vmul.f32 %v719_v45, %v456_v58 }
 0x1f0   : > { %v466_v60 = vadd.f32 %v720_v48, %v461_v59 }
 0x1f2   : > { %468 = vst.msk [vmem:[%s321_s11 + $0x8] sm:$0xff] %vm347_vm0, %v466_v60 }
 0x1f3   : > { %872 = shalt.err (!%p869_p10)
}
 0x1f4   : > { %s928_s19 = smov 128   ;;  %s929_s13 = smov 8  }
 0x1f5   : > { %650 = dma.vmem_to_hbm [thread:$0]  (%p1053_p3), %s483_s7, 256, %s485_s25, %s470_s15, %s928_s19, %s928_s19, %s929_s13  }
 0x1f6 PF: > { %s499_s11 = sand.u32 1, %s907_s21   ;;  %p1163_p12 = scmp.ge.s32.totalorder %s919_s24, 2 }
 0x1f7   : > { %s500_s26 = scalar_lea.sflag [#allocation5], %s499_s11 }
 0x1f8   : > { %p667_p13 = pnand %p1163_p12, %p1000_p6 }
 0x1fa   : > { %p668_p0 = pneg %p667_p13 }
 0x1fc   : > { %902 = dma.done.wait (%p668_p0), %s500_s26, 256  }
 0x1fd   : > { %904 = vsyncadd (%p668_p0), %s500_s26, 4294967040  ;;  %p21_p5 = scmp.ge.s32.totalorder %s1040_s10, 4   ;;  %s1164_s21 = smov %s911_s22 }
 0x1fe   : > { %s1165_s22 = smov %s915_s23  ;;  %s1166_s23 = smov %s1049_s17 }
 0x1ff   : > { %s1167_s24 = smov %s1040_s10  ;;  %23 = sbr.rel (!%p21_p5) target bundleno = 7 (0x7), region = 101 }
 0x204   :  { %506 = vsyncpa [#allocation4], 1 }
 0x205   :  { %508 = vsyncpa [#allocation4 + $0x1], 1 }
 0x206   :  { %509 = vsyncpa [#allocation7], 1 }
 0x207   :  { %510 = vsyncpa [#allocation10], 1 }
 0x208   :  { %511 = vsyncpa [#allocation5], 1 }
 0x209   :  { %513 = vsyncpa [#allocation5 + $0x1], 1 }

</bundles_post_ra>
